<compile_context>
chip_gen: v7x
topology: tpu7x:2x2x1
jax: 0.10.0
libtpu: 0.0.40
codegen_flags: <defaults>
</compile_context>

<pallas_src>
import functools

import jax
import jax.numpy as jnp
from jax import lax
from jax.experimental import pallas as pl
from jax.experimental.pallas import tpu as pltpu


def _ceil_div(a, b):
    return -(-a // b)


def _num_tensorcores_per_chip():
    """Best-effort TensorCores-per-chip count. Perf heuristic only (never affects
    correctness): v5e/v6e have 1 TC per chip, v4/v5p (megacore) and v7x have 2."""
    try:
        kind = jax.devices()[0].device_kind.lower()
    except Exception:
        return 1
    for tag in ("v4", "v5p", "7"):
        if tag in kind:
            return 2
    return 1


def _grid_steps(n_batch):
    """1 grid step on single-TC chips (amortize pipeline overhead), num_tc
    parallel steps on multi-TC chips (give every TensorCore work)."""
    tc = _num_tensorcores_per_chip()
    if tc > 1 and n_batch % tc == 0:
        return tc
    return 1


def _cbr_kernel(x_ref, w_ref, bias_ref, o_ref, *, K, S, H, HO, pad, NB):
    """One grid step processes NB batch elements with a single fused MXU matmul.

    x_ref:    (NB, H, W*CIN)      lane-dense input (W and C fused in lanes)
    w_ref:    (K*W*CIN, WO*COUT)  fused banded weights (kw offsets, CIN
                                  contraction, W zero-padding and BN scale all
                                  folded in), kh-major rows
    bias_ref: (1, WO*COUT)        folded BN bias, tiled across WO
    o_ref:    (NB, HO, WO*COUT)   lane-dense output
    """
    WC = x_ref.shape[-1]
    row_blocks = []
    for n in range(NB):                        # static unroll (NB is 1 or the batch)
        x = x_ref[n]                           # (H, WC) load
        slabs = []
        for kh in range(K):
            # Output row ho reads input row r = ho*S + kh - pad; rows outside
            # [0, H) are the H-direction zero halo, built here in registers
            # (no VMEM scratch, no per-step pad-row stores).
            ho_lo = min(HO, max(0, _ceil_div(pad - kh, S)))
            ho_hi = min(HO, max(ho_lo, (H - 1 - kh + pad) // S + 1))
            n_valid = ho_hi - ho_lo
            pieces = []
            if ho_lo > 0:
                pieces.append(jnp.zeros((ho_lo, WC), x.dtype))
            if n_valid > 0:
                r_lo = ho_lo * S + kh - pad
                if S == 1:
                    pieces.append(x[r_lo:r_lo + n_valid])
                else:
                    # TODO(synk): stride>1 path is correctness-first (per-row
                    # slices); compact the strided rows once per step instead.
                    pieces.append(jnp.concatenate(
                        [x[r_lo + j * S:r_lo + j * S + 1] for j in range(n_valid)],
                        axis=0))
            if HO - ho_lo - n_valid > 0:
                pieces.append(jnp.zeros((HO - ho_lo - n_valid, WC), x.dtype))
            slabs.append(pieces[0] if len(pieces) == 1
                         else jnp.concatenate(pieces, axis=0))
        # (HO, K*WC): im2col tile for this batch element, kh-major lane order,
        # matching the row order of the fused banded weight matrix.
        row_blocks.append(jnp.concatenate(slabs, axis=1))
    rows = (row_blocks[0] if NB == 1
            else jnp.concatenate(row_blocks, axis=0))          # (NB*HO, K*WC)

    # Single MXU matmul per grid step (replaces K small push/pop cycles).
    acc = jnp.dot(rows, w_ref[...], preferred_element_type=jnp.float32)
    y = jnp.maximum(acc + bias_ref[...], 0.0)                  # folded-BN bias + ReLU
    for n in range(NB):
        o_ref[n] = y[n * HO:(n + 1) * HO].astype(o_ref.dtype)


def _build_fused_weights(weight, scale_c, W, WO, S, pad):
    """(COUT, CIN, K, K) -> (K*W*CIN, WO*COUT) banded matrix with BN scale folded.

    band[kh*W*CIN + w*CIN + c, ow*COUT + co] = weight[co, c, kh, kw] * scale_c[co]
        with kw = w - ow*S + pad; entries whose kw falls outside [0, K) are zero,
    which folds the conv's W-direction zero padding into the weights.
    """
    COUT, CIN, K, _ = weight.shape
    w_scaled = weight.astype(jnp.float32) * scale_c[:, None, None, None]
    w_t = jnp.transpose(w_scaled, (2, 3, 1, 0))                # (kh, kw, c, co)
    ow = jnp.arange(WO)[:, None]                               # (WO, 1)
    kw = jnp.arange(K)[None, :]                                # (1, K)
    iw = ow * S + kw - pad                                     # (WO, K) input column
    onehot = (iw[:, :, None] == jnp.arange(W)[None, None, :]).astype(jnp.float32)
    band = jnp.einsum("qkw,hkcf->hwcqf", onehot, w_t)          # (K, W, CIN, WO, COUT)
    return band.reshape(K * W * CIN, WO * COUT)


def cbr_make_params(weight, gamma, beta, running_mean, running_var, *,
                    width, stride, eps=1e-5, compute_dtype=jnp.float32):
    """Fold inference BatchNorm into the conv and build the fused banded weights.

    Pure function of the fixed inference parameters: call ONCE and reuse the
    result across forward calls (per-call rebuilding was a review finding).
    compute_dtype=jnp.bfloat16 is recommended on v6e/v7x when tolerances allow;
    accumulation inside the kernel is always f32.
    """
    COUT, CIN, K, _ = weight.shape
    pad = K // 2
    WO = (width + 2 * pad - K) // stride + 1
    inv_std = lax.rsqrt(running_var.astype(jnp.float32) + eps)
    scale_c = gamma.astype(jnp.float32) * inv_std                            # (COUT,)
    bias_c = beta.astype(jnp.float32) - running_mean.astype(jnp.float32) * scale_c
    band = _build_fused_weights(weight, scale_c, width, WO, stride, pad)
    band = band.astype(compute_dtype)
    bias = jnp.tile(bias_c, WO).reshape(1, WO * COUT)          # lane = ow*COUT + co
    return band, bias


def _cbr_lane_dense(x_flat, band, bias, *, kernel_size, stride, out_rows):
    """x_flat: (N, H, W*CIN) lane-dense -> (N, HO, WO*COUT) lane-dense."""
    N, H, WC = x_flat.shape
    KWC, OC = band.shape
    K, S, HO = kernel_size, stride, out_rows
    g = _grid_steps(N)
    NB = N // g
    kernel = functools.partial(_cbr_kernel, K=K, S=S, H=H, HO=HO, pad=K // 2, NB=NB)
    # NOTE: band/bias are grid-invariant; at these sizes double-buffering them is
    # harmless — revisit with pipeline_mode=pl.Buffered(1) once the band grows
    # (matters for v7x's 64 MiB VMEM).
    return pl.pallas_call(
        kernel,
        out_shape=jax.ShapeDtypeStruct((N, HO, OC), x_flat.dtype),
        grid=(g,),
        in_specs=[
            pl.BlockSpec((NB, H, WC), lambda i: (i, 0, 0)),
            pl.BlockSpec((KWC, OC), lambda i: (0, 0)),
            pl.BlockSpec((1, OC), lambda i: (0, 0)),
        ],
        out_specs=pl.BlockSpec((NB, HO, OC), lambda i: (i, 0, 0)),
        compiler_params=pltpu.CompilerParams(
            dimension_semantics=("parallel",),
        ),
    )(x_flat, band, bias)


@functools.partial(jax.jit, static_argnames=("kernel_size", "stride"))
def cbr_apply(x_nchw, band, bias, *, kernel_size, stride):
    """CBR forward with pre-built params. (N, CIN, H, W) -> (N, COUT, HO, WO)."""
    N, CIN, H, W = x_nchw.shape
    K, S = kernel_size, stride
    pad = K // 2
    HO = (H + 2 * pad - K) // S + 1
    WO = (W + 2 * pad - K) // S + 1
    WC = W * CIN
    KWC, OC = band.shape
    assert KWC == K * WC and OC % WO == 0, "params do not match input shape"
    COUT = OC // WO

    # NCHW -> (N, H, W*CIN) lane-dense (interface requirement of the PyTorch
    # module).  TODO(synk): in a multi-layer FSPPF stack, keep the lane-dense
    # layout across layers (call _cbr_lane_dense directly) instead of paying the
    # NCHW relayout HBM passes on every layer.
    x_flat = jnp.transpose(x_nchw, (0, 2, 3, 1)).reshape(N, H, WC).astype(band.dtype)

    out_flat = _cbr_lane_dense(x_flat, band, bias,
                               kernel_size=K, stride=S, out_rows=HO)
    out = jnp.transpose(out_flat.reshape(N, HO, WO, COUT), (0, 3, 1, 2))
    return out.astype(x_nchw.dtype)


def cbr_forward(x_nchw, weight, gamma, beta, running_mean, running_var, *,
                stride, eps=1e-5, compute_dtype=jnp.float32):
    """One-shot convenience wrapper (prefer cbr_make_params + cbr_apply)."""
    K = weight.shape[-1]
    band, bias = cbr_make_params(weight, gamma, beta, running_mean, running_var,
                                 width=x_nchw.shape[-1], stride=stride, eps=eps,
                                 compute_dtype=compute_dtype)
    return cbr_apply(x_nchw, band, bias, kernel_size=K, stride=stride)


def _reference(x_nchw, weight, gamma, beta, running_mean, running_var, *,
               stride, eps=1e-5):
    """Pure-JAX reference (NCHW conv + inference BN + ReLU)."""
    K = weight.shape[-1]
    pad = K // 2
    y = lax.conv_general_dilated(
        x_nchw, weight,
        window_strides=(stride, stride),
        padding=((pad, pad), (pad, pad)),
        dimension_numbers=("NCHW", "OIHW", "NCHW"),
    )
    inv_std = 1.0 / jnp.sqrt(running_var + eps)
    scale = (gamma * inv_std)[None, :, None, None]
    bias = (beta - running_mean * gamma * inv_std)[None, :, None, None]
    return jnp.maximum(y * scale + bias, 0.0)


if __name__ == "__main__":
    # Shapes consistent with CBR(in_channels=4, out_channels=8, kernel_size=3, stride=1)
    N, CIN, H, W = 2, 4, 16, 16
    COUT, K, STRIDE = 8, 3, 1

    key = jax.random.PRNGKey(0)
    kx, kw, kg, kb, km, kv = jax.random.split(key, 6)

    x = jax.random.normal(kx, (N, CIN, H, W), dtype=jnp.float32)
    weight = jax.random.normal(kw, (COUT, CIN, K, K), dtype=jnp.float32) * 0.1
    gamma = 1.0 + 0.1 * jax.random.normal(kg, (COUT,), dtype=jnp.float32)
    beta = 0.1 * jax.random.normal(kb, (COUT,), dtype=jnp.float32)
    running_mean = 0.05 * jax.random.normal(km, (COUT,), dtype=jnp.float32)
    running_var = jnp.abs(1.0 + 0.1 * jax.random.normal(kv, (COUT,), dtype=jnp.float32))

    # Build folded-BN fused weights ONCE (pure function of fixed inference params).
    band, bias = cbr_make_params(weight, gamma, beta, running_mean, running_var,
                                 width=W, stride=STRIDE)

    out = cbr_apply(x, band, bias, kernel_size=K, stride=STRIDE)
    out = jax.block_until_ready(out)

    ref = _reference(x, weight, gamma, beta, running_mean, running_var, stride=STRIDE)
    assert out.shape == (N, COUT, H // STRIDE, W // STRIDE)
    assert jnp.allclose(out, ref, atol=1e-4, rtol=1e-4), "mismatch vs JAX reference"

    print("KERNEL_OK")
</pallas_src>

<mosaic_0001>
module attributes {stable_mosaic.version = 11 : i64} {
  func.func @_cbr_kernel(%arg0: i32, %arg1: memref<2x16x64xf32, #tpu.memory_space<vmem>>, %arg2: memref<192x128xf32, #tpu.memory_space<vmem>>, %arg3: memref<1x128xf32, #tpu.memory_space<vmem>>, %arg4: memref<2x16x128xf32, #tpu.memory_space<vmem>>) attributes {dimension_semantics = [#tpu.dimension_semantics<parallel>], iteration_bounds = array<i64: 1>, scalar_prefetch = 0 : i64, scratch_operands = 0 : i64, tpu.core_type = #tpu.core_type<tc>, window_params = [{transform_indices = @transform_0, window_bounds = array<i64: 2, 16, 64>}, {pipeline_mode = #tpu.pipeline_mode<synchronous>, transform_indices = @transform_1, window_bounds = array<i64: 192, 128>}, {pipeline_mode = #tpu.pipeline_mode<synchronous>, transform_indices = @transform_2, window_bounds = array<i64: 1, 128>}, {transform_indices = @transform_3, window_bounds = array<i64: 2, 16, 128>}]} {
    %c0 = arith.constant 0 : index
    %c0_0 = arith.constant 0 : index
    %c0_1 = arith.constant 0 : index
    %0 = vector.load %arg1[%c0, %c0_0, %c0_1] : memref<2x16x64xf32, #tpu.memory_space<vmem>>, vector<1x16x64xf32>
    %1 = vector.shape_cast %0 : vector<1x16x64xf32> to vector<16x64xf32>
    %cst = arith.constant 0.000000e+00 : f32
    %2 = vector.broadcast %cst : f32 to vector<1x64xf32>
    %3 = vector.extract_strided_slice %1 {offsets = [0, 0], sizes = [15, 64], strides = [1, 1]} : vector<16x64xf32> to vector<15x64xf32>
    %4 = tpu.concatenate %2, %3 in 0 : vector<1x64xf32>, vector<15x64xf32> -> vector<16x64xf32>
    %5 = vector.extract_strided_slice %1 {offsets = [1, 0], sizes = [15, 64], strides = [1, 1]} : vector<16x64xf32> to vector<15x64xf32>
    %cst_2 = arith.constant 0.000000e+00 : f32
    %6 = vector.broadcast %cst_2 : f32 to vector<1x64xf32>
    %7 = tpu.concatenate %5, %6 in 0 : vector<15x64xf32>, vector<1x64xf32> -> vector<16x64xf32>
    %8 = tpu.concatenate %4, %1, %7 in 1 : vector<16x64xf32>, vector<16x64xf32>, vector<16x64xf32> -> vector<16x192xf32>
    %c1 = arith.constant 1 : index
    %c0_3 = arith.constant 0 : index
    %c0_4 = arith.constant 0 : index
    %9 = vector.load %arg1[%c1, %c0_3, %c0_4] : memref<2x16x64xf32, #tpu.memory_space<vmem>>, vector<1x16x64xf32>
    %10 = vector.shape_cast %9 : vector<1x16x64xf32> to vector<16x64xf32>
    %cst_5 = arith.constant 0.000000e+00 : f32
    %11 = vector.broadcast %cst_5 : f32 to vector<1x64xf32>
    %12 = vector.extract_strided_slice %10 {offsets = [0, 0], sizes = [15, 64], strides = [1, 1]} : vector<16x64xf32> to vector<15x64xf32>
    %13 = tpu.concatenate %11, %12 in 0 : vector<1x64xf32>, vector<15x64xf32> -> vector<16x64xf32>
    %14 = vector.extract_strided_slice %10 {offsets = [1, 0], sizes = [15, 64], strides = [1, 1]} : vector<16x64xf32> to vector<15x64xf32>
    %cst_6 = arith.constant 0.000000e+00 : f32
    %15 = vector.broadcast %cst_6 : f32 to vector<1x64xf32>
    %16 = tpu.concatenate %14, %15 in 0 : vector<15x64xf32>, vector<1x64xf32> -> vector<16x64xf32>
    %17 = tpu.concatenate %13, %10, %16 in 1 : vector<16x64xf32>, vector<16x64xf32>, vector<16x64xf32> -> vector<16x192xf32>
    %18 = tpu.concatenate %8, %17 in 0 : vector<16x192xf32>, vector<16x192xf32> -> vector<32x192xf32>
    %c0_7 = arith.constant 0 : index
    %c0_8 = arith.constant 0 : index
    %19 = vector.load %arg2[%c0_7, %c0_8] : memref<192x128xf32, #tpu.memory_space<vmem>>, vector<192x128xf32>
    %cst_9 = arith.constant dense<0.000000e+00> : vector<32x128xf32>
    %20 = tpu.matmul %18, %19, %cst_9 {dimension_numbers = #tpu.dot_dimension_numbers<[1], [0], [0], [1], [0, 0, 1, 1], [], []>} : vector<32x192xf32>, vector<192x128xf32>, vector<32x128xf32> -> vector<32x128xf32>
    %c0_10 = arith.constant 0 : index
    %c0_11 = arith.constant 0 : index
    %21 = vector.load %arg3[%c0_10, %c0_11] : memref<1x128xf32, #tpu.memory_space<vmem>>, vector<1x128xf32>
    %22 = vector.broadcast %21 : vector<1x128xf32> to vector<32x128xf32>
    %23 = arith.addf %20, %22 : vector<32x128xf32>
    %cst_12 = arith.constant 0.000000e+00 : f32
    %24 = vector.broadcast %cst_12 : f32 to vector<32x128xf32>
    %25 = arith.maximumf %23, %24 : vector<32x128xf32>
    %26 = vector.extract_strided_slice %25 {offsets = [0, 0], sizes = [16, 128], strides = [1, 1]} : vector<32x128xf32> to vector<16x128xf32>
    %c0_13 = arith.constant 0 : index
    %c0_14 = arith.constant 0 : index
    %c0_15 = arith.constant 0 : index
    %27 = vector.load %arg4[%c0_13, %c0_14, %c0_15] : memref<2x16x128xf32, #tpu.memory_space<vmem>>, vector<1x16x128xf32>
    %28 = vector.shape_cast %27 : vector<1x16x128xf32> to vector<16x128xf32>
    %29 = vector.shape_cast %26 : vector<16x128xf32> to vector<1x16x128xf32>
    tpu.vector_store %arg4[%c0_13, %c0_14, %c0_15], %29 {strides = array<i32>} : memref<2x16x128xf32, #tpu.memory_space<vmem>>, vector<1x16x128xf32>,
    %30 = vector.extract_strided_slice %25 {offsets = [16, 0], sizes = [16, 128], strides = [1, 1]} : vector<32x128xf32> to vector<16x128xf32>
    %c1_16 = arith.constant 1 : index
    %c0_17 = arith.constant 0 : index
    %c0_18 = arith.constant 0 : index
    %31 = vector.load %arg4[%c1_16, %c0_17, %c0_18] : memref<2x16x128xf32, #tpu.memory_space<vmem>>, vector<1x16x128xf32>
    %32 = vector.shape_cast %31 : vector<1x16x128xf32> to vector<16x128xf32>
    %33 = vector.shape_cast %30 : vector<16x128xf32> to vector<1x16x128xf32>
    tpu.vector_store %arg4[%c1_16, %c0_17, %c0_18], %33 {strides = array<i32>} : memref<2x16x128xf32, #tpu.memory_space<vmem>>, vector<1x16x128xf32>,
    return
  }
  func.func @transform_0(%arg0: i32) -> (i32, i32, i32) {
    %c0_i32 = arith.constant 0 : i32
    %c0_i32_0 = arith.constant 0 : i32
    %c0_i32_1 = arith.constant 0 : i32
    return %arg0, %c0_i32, %c0_i32_0 : i32, i32, i32
  }
  func.func @transform_1(%arg0: i32) -> (i32, i32) {
    %c0_i32 = arith.constant 0 : i32
    %c0_i32_0 = arith.constant 0 : i32
    %c0_i32_1 = arith.constant 0 : i32
    return %c0_i32, %c0_i32_0 : i32, i32
  }
  func.func @transform_2(%arg0: i32) -> (i32, i32) {
    %c0_i32 = arith.constant 0 : i32
    %c0_i32_0 = arith.constant 0 : i32
    %c0_i32_1 = arith.constant 0 : i32
    return %c0_i32, %c0_i32_0 : i32, i32
  }
  func.func @transform_3(%arg0: i32) -> (i32, i32, i32) {
    %c0_i32 = arith.constant 0 : i32
    %c0_i32_0 = arith.constant 0 : i32
    %c0_i32_1 = arith.constant 0 : i32
    return %arg0, %c0_i32, %c0_i32_0 : i32, i32, i32
  }
}

</mosaic_0001>

<bundles_post_ra>
// kernel: cbr_apply.1
= control target key start
LH: loop header
LB: loop body
LE: loop exit
PB: predicated region body
PF: predicated region fallthrough
CT: control target
= control target key end

     0   :  { %v284_v3 = vmov 0.0|0.0   ;;  %vm25_vm0 = vcmask 1046528   ;;  %s285_s27 = smov 64   ;;  %vm37_vm1 = vcmask 523264   ;;  %vm18_vm2 = vcmask 1040384   ;;  %s475_s0 = inlined_call_operand.vmem [shape: f32[2,16,64], index: 0, kind: input, shape index: {}]   ;;  %s476_s1 = inlined_call_operand.vmem [shape: f32[192,128], index: 1, kind: input, shape index: {}]   ;;  %s477_s2 = inlined_call_operand.vmem [shape: f32[1,128], index: 2, kind: input, shape index: {}]   ;;  %s478_s3 = inlined_call_operand.vmem [shape: f32[2,16,128], index: 3, kind: output, shape index: {}]  }
   0x1   :  { %v309_v0 = vld [vmem:[%s475_s0] sm:$0xff]  ;;  %v314_v1 = vld [vmem:[%s475_s0 + $0x10] sm:$0xff]  ;;  %v15_v2 = vld [vmem:[%s475_s0 + $0x8] sm:$0xff]  ;;  %212 = vmatprep.subr.bf16.mxu0 %v284_v3  ;;  %248 = vmatprep.subr.bf16.mxu1 %v284_v3 }
   0x2   :  { %v274_v4 = vpack.i.bf16 %v314_v1, %v309_v0  ;;  %v204_v5 = vld [vmem:[%s475_s0 + $0x18] sm:$0xff]  ;;  %v64_v6 = vld [vmem:[%s476_s1] sm:$0xff]  ;;  %v65_v7 = vld [vmem:[%s476_s1 + $0x8] sm:$0xff]  ;;  %v26_v8 = vrot.slane %v309_v0, 1  ;;  %v27_v9 = vrot.slane %v15_v2, 1  ;;  %v51_v10 = vrot.slane %v314_v1, 1 }
   0x3   :  { %v213_v11 = vpack.c.bf16 %v65_v7, %v64_v6  ;;  %v66_v12 = vld [vmem:[%s476_s1 + $0x10] sm:$0xff]  ;;  %v67_v13 = vld [vmem:[%s476_s1 + $0x18] sm:$0xff]  ;;  %v52_v14 = vrot.slane %v204_v5, 1  ;;  %v279_v15 = vpack.i.bf16 %v204_v5, %v15_v2  ;;  %v68_v20 = vld [vmem:[%s476_s1 + $0x20] sm:$0xff]  ;;  %v19_v22 = vrot.slane %v309_v0, 7 }
   0x4   :  { %275 = vrot.lane.b32.xlu0 %v274_v4, %s285_s27  ;;  %v28_v16 = vsel %vm25_vm0, %v26_v8, %v27_v9  ;;  %v342_v17 = vsel %vm25_vm0, %v27_v9, 0.0  ;;  %v216_v18 = vpack.c.bf16 %v67_v13, %v66_v12  ;;  %v69_v21 = vld [vmem:[%s476_s1 + $0x28] sm:$0xff]  ;;  %v20_v24 = vrot.slane %v15_v2, 7  ;;  %v70_v30 = vld [vmem:[%s476_s1 + $0x30] sm:$0xff]  ;;  %v71_v31 = vld [vmem:[%s476_s1 + $0x38] sm:$0xff] }
   0x5   :  { %214 = vmatpush1.bf16.msra.mxu0 %v213_v11  ;;  %260 = vmatpush1.bf16.msra.mxu1 %v213_v11  ;;  %v53_v19 = vsel %vm25_vm0, %v51_v10, %v52_v14  ;;  %v355_v23 = vsel %vm25_vm0, %v52_v14, 0.0  ;;  %v45_v25 = vrot.slane %v314_v1, 7  ;;  %v46_v26 = vrot.slane %v204_v5, 7  ;;  %v72_v33 = vld [vmem:[%s476_s1 + $0x40] sm:$0xff]  ;;  %v73_v34 = vld [vmem:[%s476_s1 + $0x48] sm:$0xff]  ;;  %v74_v36 = vld [vmem:[%s476_s1 + $0x50] sm:$0xff] }
   0x6   :  { %215 = vmatprep.subr.bf16.mxu0 %v284_v3  ;;  %249 = vmatprep.subr.bf16.mxu1 %v284_v3  ;;  %v363_v27 = vsel %vm18_vm2, %v19_v22, %v20_v24  ;;  %v219_v28 = vpack.c.bf16 %v69_v21, %v68_v20  ;;  %v222_v32 = vpack.c.bf16 %v71_v31, %v70_v30  ;;  %v75_v37 = vld [vmem:[%s476_s1 + $0x58] sm:$0xff]  ;;  %v76_v39 = vld [vmem:[%s476_s1 + $0x60] sm:$0xff]  ;;  %v77_v40 = vld [vmem:[%s476_s1 + $0x68] sm:$0xff]  ;;  %v24_v58 = vsel %vm18_vm2, 0.0, %v19_v22 }
   0x7   :  { %206 = vmatprep.mubr.msk.f32.mxu0 %vm37_vm1, %v28_v16  ;;  %208 = vmatprep.mubr.msk.f32.mxu1 %vm37_vm1, %v53_v19  ;;  %v368_v29 = vsel %vm18_vm2, %v45_v25, %v46_v26  ;;  %v225_v35 = vpack.c.bf16 %v73_v34, %v72_v33  ;;  %v228_v38 = vpack.c.bf16 %v75_v37, %v74_v36  ;;  %v78_v42 = vld [vmem:[%s476_s1 + $0x70] sm:$0xff]  ;;  %v79_v43 = vld [vmem:[%s476_s1 + $0x78] sm:$0xff]  ;;  %v80_v45 = vld [vmem:[%s476_s1 + $0x80] sm:$0xff]  ;;  %v50_v59 = vsel %vm18_vm2, 0.0, %v45_v25 }
   0x8   :  { %280 = vrot.lane.b32.xlu0 %v279_v15, %s285_s27  ;;  %v231_v41 = vpack.c.bf16 %v77_v40, %v76_v39  ;;  %v234_v44 = vpack.c.bf16 %v79_v43, %v78_v42  ;;  %v81_v46 = vld [vmem:[%s476_s1 + $0x88] sm:$0xff]  ;;  %v82_v48 = vld [vmem:[%s476_s1 + $0x90] sm:$0xff]  ;;  %v83_v49 = vld [vmem:[%s476_s1 + $0x98] sm:$0xff] }
   0x9   :  { %217 = vmatpush1.bf16.msra.mxu0 %v216_v18  ;;  %261 = vmatpush1.bf16.msra.mxu1 %v216_v18  ;;  %v237_v47 = vpack.c.bf16 %v81_v46, %v80_v45  ;;  %v240_v50 = vpack.c.bf16 %v83_v49, %v82_v48  ;;  %v84_v51 = vld [vmem:[%s476_s1 + $0xa0] sm:$0xff]  ;;  %v85_v52 = vld [vmem:[%s476_s1 + $0xa8] sm:$0xff]  ;;  %v86_v54 = vld [vmem:[%s476_s1 + $0xb0] sm:$0xff] }
   0xa   :  { %218 = vmatprep.subr.bf16.mxu0 %v284_v3  ;;  %250 = vmatprep.subr.bf16.mxu1 %v284_v3  ;;  %v243_v53 = vpack.c.bf16 %v85_v52, %v84_v51  ;;  %v87_v55 = vld [vmem:[%s476_s1 + $0xb8] sm:$0xff]  ;;  %v205_v5 = vld [vmem:[%s477_s2] ss:$0 sm:$0xff] }
   0xb   :  { %v246_v56 = vpack.c.bf16 %v87_v55, %v86_v54 }
   0xd   :  { %220 = vmatpush1.bf16.msra.mxu0 %v219_v28  ;;  %262 = vmatpush1.bf16.msra.mxu1 %v219_v28 }
   0xe   :  { %221 = vmatprep.subr.bf16.mxu0 %v284_v3  ;;  %251 = vmatprep.subr.bf16.mxu1 %v284_v3 }
  0x11   :  { %223 = vmatpush1.bf16.msra.mxu0 %v222_v32  ;;  %263 = vmatpush1.bf16.msra.mxu1 %v222_v32 }
  0x12   :  { %224 = vmatprep.subr.bf16.mxu0 %v284_v3  ;;  %252 = vmatprep.subr.bf16.mxu1 %v284_v3 }
  0x15   :  { %226 = vmatpush1.bf16.msra.mxu0 %v225_v35  ;;  %264 = vmatpush1.bf16.msra.mxu1 %v225_v35 }
  0x16   :  { %227 = vmatprep.subr.bf16.mxu0 %v284_v3  ;;  %253 = vmatprep.subr.bf16.mxu1 %v284_v3 }
  0x19   :  { %229 = vmatpush1.bf16.msra.mxu0 %v228_v38  ;;  %265 = vmatpush1.bf16.msra.mxu1 %v228_v38 }
  0x1a   :  { %230 = vmatprep.subr.bf16.mxu0 %v284_v3  ;;  %254 = vmatprep.subr.bf16.mxu1 %v284_v3 }
  0x1d   :  { %232 = vmatpush1.bf16.msra.mxu0 %v231_v41  ;;  %266 = vmatpush1.bf16.msra.mxu1 %v231_v41 }
  0x1e   :  { %233 = vmatprep.subr.bf16.mxu0 %v284_v3  ;;  %255 = vmatprep.subr.bf16.mxu1 %v284_v3 }
  0x21   :  { %235 = vmatpush1.bf16.msra.mxu0 %v234_v44  ;;  %267 = vmatpush1.bf16.msra.mxu1 %v234_v44 }
  0x22   :  { %236 = vmatprep.subr.bf16.mxu0 %v284_v3  ;;  %256 = vmatprep.subr.bf16.mxu1 %v284_v3 }
  0x25   :  { %238 = vmatpush1.bf16.msra.mxu0 %v237_v47  ;;  %268 = vmatpush1.bf16.msra.mxu1 %v237_v47 }
  0x26   :  { %239 = vmatprep.subr.bf16.mxu0 %v284_v3  ;;  %257 = vmatprep.subr.bf16.mxu1 %v284_v3 }
  0x29   :  { %241 = vmatpush1.bf16.msra.mxu0 %v240_v50  ;;  %269 = vmatpush1.bf16.msra.mxu1 %v240_v50 }
  0x2a   :  { %242 = vmatprep.subr.bf16.mxu0 %v284_v3  ;;  %258 = vmatprep.subr.bf16.mxu1 %v284_v3 }
  0x2d   :  { %244 = vmatpush1.bf16.msra.mxu0 %v243_v53  ;;  %270 = vmatpush1.bf16.msra.mxu1 %v243_v53 }
  0x2e   :  { %245 = vmatprep.subr.bf16.mxu0 %v284_v3  ;;  %259 = vmatprep.subr.bf16.mxu1 %v284_v3 }
  0x31   :  { %247 = vmatpush1.bf16.msra.mxu0 %v246_v56  ;;  %271 = vmatpush1.bf16.msra.mxu1 %v246_v56 }
  0x76   :  { %v276_v57 = vpop.permute.xlu0 %275 }
  0x77   :  { %v278_v60 = vunpack.i.h.bf16 %v276_v57  ;;  %v277_v61 = vunpack.i.l.bf16 %v276_v57 }
  0x79   :  { %v38_v62 = vsel %vm37_vm1, %v24_v58, %v277_v61  ;;  %v62_v63 = vsel %vm37_vm1, %v50_v59, %v278_v60 }
  0x7a   :  { %v281_v2 = vpop.permute.xlu0 %280  ;;  %170 = vmatmul.mubr.f32.vlgmr.msra.gmra.mrb[0].mxu0 %v38_v62  ;;  %180 = vmatmul.mubr.f32.vlgmr.msra.gmra.mrb[0].mxu1 %v62_v63 }
  0x7b   :  { %v283_v3 = vunpack.i.h.bf16 %v281_v2  ;;  %v282_v4 = vunpack.i.l.bf16 %v281_v2  ;;  %207 = vmatprep.mubr.msk.f32.mxu0 %vm37_vm1, %v342_v17  ;;  %209 = vmatprep.mubr.msk.f32.mxu1 %vm37_vm1, %v355_v23 }
  0x7d   :  { %v39_v0 = vsel %vm37_vm1, %v363_v27, %v282_v4  ;;  %v63_v1 = vsel %vm37_vm1, %v368_v29, %v283_v3 }
  0x7e   :  { %175 = vmatmul.mubr.f32.gmra.mrb[2].mxu0 %v39_v0  ;;  %185 = vmatmul.mubr.f32.gmra.mrb[2].mxu1 %v63_v1 }
 0x14d   :  { %v171_v6 = vpop.f32.mrb[0].mxu0  ;;  %v181_v7 = vpop.f32.mrb[0].mxu1 }
 0x14e   :  { %v172_v8 = vadd.f32 %v205_v5, %v171_v6  ;;  %v182_v9 = vadd.f32 %v205_v5, %v181_v7  ;;  %v173_v10 = vpop.f32.mrb[1].mxu0  ;;  %v183_v11 = vpop.f32.mrb[1].mxu1 }
 0x150   :  { %v190_v12 = vmax.f32 %v172_v8, 0.0  ;;  %v192_v13 = vmax.f32 %v182_v9, 0.0 }
 0x151   :  { %v176_v14 = vpop.f32.mrb[2].mxu0  ;;  %v186_v15 = vpop.f32.mrb[2].mxu1 }
 0x152   :  { %194 = vst [vmem:[%s478_s3] sm:$0xff] %v190_v12  ;;  %210 = vst [vmem:[%s478_s3 + $0x10] sm:$0xff] %v192_v13  ;;  %v177_v16 = vadd.f32 %v205_v5, %v176_v14  ;;  %v187_v17 = vadd.f32 %v205_v5, %v186_v15  ;;  %v178_v18 = vpop.f32.mrb[3].mxu0  ;;  %v188_v19 = vpop.f32.mrb[3].mxu1 }
 0x154   :  { %v191_v20 = vmax.f32 %v177_v16, 0.0  ;;  %v193_v21 = vmax.f32 %v187_v17, 0.0 }
 0x156   :  { %195 = vst [vmem:[%s478_s3 + $0x8] sm:$0xff] %v191_v20  ;;  %211 = vst [vmem:[%s478_s3 + $0x18] sm:$0xff] %v193_v21 }

</bundles_post_ra>
